<compile_context>
chip_gen: v6e
topology: v6e:2x2x1
jax: 0.10.0
libtpu: 0.0.40
codegen_flags: <defaults>
</compile_context>

<pallas_src>
import functools

import jax
import jax.numpy as jnp
from jax.experimental import pallas as pl
from jax.experimental.pallas import tpu as pltpu


def _conv_block_kernel(x_ref, w1_ref, sc1_ref, sh1_ref, w2_ref, sc2_ref, sh2_ref,
                       o_ref, *, H, W):
    """Fused (conv3x3 + BN + ReLU + Dropout(eval)) x 2 for one batch element.

    Layout: channels on sublanes, flattened pixels (H*W) on lanes.
      x_ref:        (1, Cin,  H*W)
      w1_ref:       (Cmid, 9*Cin)   K ordered (ky, kx, cin)
      sc*/sh*_ref:  (C, 1)          folded BN scale / (conv-bias + BN) shift
      w2_ref:       (Cout, 9*Cmid)
      o_ref:        (1, Cout, H*W)
    """
    P = H * W
    x = x_ref[0]                                          # (Cin, P)

    # Column index (w) of every flattened pixel; used to zero taps that would read
    # across the left/right image border -> realizes padding=1 in-kernel.
    w_idx = jax.lax.broadcasted_iota(jnp.int32, (1, P), 1) % W
    valid_dxm1 = w_idx != 0           # tap reads (w-1): invalid at w == 0
    valid_dxp1 = w_idx != (W - 1)     # tap reads (w+1): invalid at w == W-1

    def im2col(a):
        """(C, P) -> (9*C, P) patch matrix; row order (ky, kx, c)."""
        C = a.shape[0]
        blocks = []
        for dy in (-1, 0, 1):
            for dx in (-1, 0, 1):
                delta = dy * W + dx   # flattened-pixel offset of this tap
                if delta == 0:
                    s = a
                elif delta > 0:
                    s = jnp.concatenate(
                        [a[:, delta:], jnp.zeros((C, delta), a.dtype)], axis=1)
                else:
                    s = jnp.concatenate(
                        [jnp.zeros((C, -delta), a.dtype), a[:, :P + delta]], axis=1)
                if dx == -1:
                    s = jnp.where(valid_dxm1, s, 0.0)
                elif dx == 1:
                    s = jnp.where(valid_dxp1, s, 0.0)
                blocks.append(s)
        return jnp.concatenate(blocks, axis=0)

    # Stage 1: single MXU matmul, lane-dense (Cmid, P) result.
    y1 = jnp.dot(w1_ref[...], im2col(x), preferred_element_type=jnp.float32)
    y1 = jnp.maximum(y1 * sc1_ref[...] + sh1_ref[...], 0.0)   # bias+BN(eval)+ReLU
    # Dropout (eval) = identity; y1 never leaves the chip.

    # Stage 2.
    y2 = jnp.dot(w2_ref[...], im2col(y1), preferred_element_type=jnp.float32)
    y2 = jnp.maximum(y2 * sc2_ref[...] + sh2_ref[...], 0.0)

    o_ref[0] = y2.astype(o_ref.dtype)                          # lane-dense store


def _fold_bn(conv_b, gamma, beta, mean, var, eps):
    scale = gamma / jnp.sqrt(var + eps)
    shift = (conv_b - mean) * scale + beta
    return scale, shift


def _w_matrix(w_oihw):
    # PyTorch (Cout, Cin, 3, 3) -> (Cout, 9*Cin), K ordered (ky, kx, cin) to match im2col.
    co, ci = w_oihw.shape[0], w_oihw.shape[1]
    return jnp.transpose(w_oihw, (0, 2, 3, 1)).reshape(co, 9 * ci)


@jax.jit
def conv_block_forward(x_nchw, p, eps=1e-5):
    """ConvBlock forward (eval mode). Input/output are NCHW like PyTorch."""
    N, Cin, H, W = x_nchw.shape
    P = H * W
    Cout = p["w1"].shape[0]

    x3 = x_nchw.reshape(N, Cin, P)        # free reshape; no transpose, no pad

    w1m = _w_matrix(p["w1"])
    w2m = _w_matrix(p["w2"])
    sc1, sh1 = _fold_bn(p["b1"], p["gamma1"], p["beta1"], p["mean1"], p["var1"], eps)
    sc2, sh2 = _fold_bn(p["b2"], p["gamma2"], p["beta2"], p["mean2"], p["var2"], eps)

    out = pl.pallas_call(
        functools.partial(_conv_block_kernel, H=H, W=W),
        out_shape=jax.ShapeDtypeStruct((N, Cout, P), jnp.float32),
        grid_spec=pltpu.PrefetchScalarGridSpec(
            num_scalar_prefetch=0,
            grid=(N,),
            in_specs=[
                pl.BlockSpec((1, Cin, P), lambda n: (n, 0, 0)),
                pl.BlockSpec((Cout, 9 * Cin), lambda n: (0, 0)),    # resident weights
                pl.BlockSpec((Cout, 1), lambda n: (0, 0)),
                pl.BlockSpec((Cout, 1), lambda n: (0, 0)),
                pl.BlockSpec((Cout, 9 * Cout), lambda n: (0, 0)),
                pl.BlockSpec((Cout, 1), lambda n: (0, 0)),
                pl.BlockSpec((Cout, 1), lambda n: (0, 0)),
            ],
            out_specs=pl.BlockSpec((1, Cout, P), lambda n: (n, 0, 0)),
        ),
        compiler_params=pltpu.CompilerParams(
            dimension_semantics=("parallel",)),   # batch axis -> v7x's 2 TensorCores
    )(x3, w1m, sc1.reshape(Cout, 1), sh1.reshape(Cout, 1),
      w2m, sc2.reshape(Cout, 1), sh2.reshape(Cout, 1))

    return out.reshape(N, Cout, H, W)     # free reshape back to NCHW


def _reference_forward(x, p, eps=1e-5):
    """Pure-JAX reference (eval mode) for validation."""
    def stage(h, w, b, gamma, beta, mean, var):
        y = jax.lax.conv_general_dilated(
            h, w, window_strides=(1, 1), padding=((1, 1), (1, 1)),
            dimension_numbers=("NCHW", "OIHW", "NCHW"))
        y = y + b[None, :, None, None]
        y = (y - mean[None, :, None, None]) * (
            gamma[None, :, None, None] / jnp.sqrt(var[None, :, None, None] + eps)
        ) + beta[None, :, None, None]
        return jnp.maximum(y, 0.0)

    h = stage(x, p["w1"], p["b1"], p["gamma1"], p["beta1"], p["mean1"], p["var1"])
    return stage(h, p["w2"], p["b2"], p["gamma2"], p["beta2"], p["mean2"], p["var2"])


def init_conv_block_params(key, in_channels, out_channels):
    """Deterministic synthetic parameters matching ConvBlock's shapes."""
    keys = jax.random.split(key, 10)
    p = {}
    p["w1"] = jax.random.normal(keys[0], (out_channels, in_channels, 3, 3),
                                jnp.float32) * 0.1
    p["b1"] = jax.random.normal(keys[1], (out_channels,), jnp.float32) * 0.1
    p["gamma1"] = 1.0 + 0.1 * jax.random.normal(keys[2], (out_channels,), jnp.float32)
    p["beta1"] = 0.1 * jax.random.normal(keys[3], (out_channels,), jnp.float32)
    p["mean1"] = 0.1 * jax.random.normal(keys[4], (out_channels,), jnp.float32)
    p["var1"] = jnp.abs(1.0 + 0.1 * jax.random.normal(keys[5], (out_channels,), jnp.float32))
    p["w2"] = jax.random.normal(keys[6], (out_channels, out_channels, 3, 3),
                                jnp.float32) * 0.1
    p["b2"] = jax.random.normal(keys[7], (out_channels,), jnp.float32) * 0.1
    p["gamma2"] = 1.0 + 0.1 * jax.random.normal(keys[8], (out_channels,), jnp.float32)
    p["beta2"] = 0.1 * jax.random.normal(keys[9], (out_channels,), jnp.float32)
    p["mean2"] = jnp.zeros((out_channels,), jnp.float32)
    p["var2"] = jnp.ones((out_channels,), jnp.float32)
    return p


if __name__ == "__main__":
    key = jax.random.PRNGKey(0)
    k_x, k_p = jax.random.split(key)

    in_channels, out_channels = 4, 8
    N, H, W = 2, 16, 16

    x = jax.random.normal(k_x, (N, in_channels, H, W), jnp.float32)  # NCHW
    params = init_conv_block_params(k_p, in_channels, out_channels)

    y = conv_block_forward(x, params)
    y = jax.block_until_ready(y)

    assert y.shape == (N, out_channels, H, W), y.shape
    assert y.dtype == jnp.float32
    assert bool(jnp.all(jnp.isfinite(y)))
    assert bool(jnp.all(y >= 0.0))  # ReLU output

    y_ref = _reference_forward(x, params)
    max_err = float(jnp.max(jnp.abs(y - y_ref)))
    assert max_err < 1e-1, f"kernel vs reference mismatch: {max_err}"

    print("KERNEL_OK")
</pallas_src>

<mosaic_0001>
module attributes {stable_mosaic.version = 11 : i64} {
  func.func @_conv_block_kernel(%arg0: i32, %arg1: memref<1x4x256xf32, #tpu.memory_space<vmem>>, %arg2: memref<8x36xf32, #tpu.memory_space<vmem>>, %arg3: memref<8x1xf32, #tpu.memory_space<vmem>>, %arg4: memref<8x1xf32, #tpu.memory_space<vmem>>, %arg5: memref<8x72xf32, #tpu.memory_space<vmem>>, %arg6: memref<8x1xf32, #tpu.memory_space<vmem>>, %arg7: memref<8x1xf32, #tpu.memory_space<vmem>>, %arg8: memref<1x8x256xf32, #tpu.memory_space<vmem>>) attributes {dimension_semantics = [#tpu.dimension_semantics<parallel>], iteration_bounds = array<i64: 2>, scalar_prefetch = 0 : i64, scratch_operands = 0 : i64, tpu.core_type = #tpu.core_type<tc>, window_params = [{transform_indices = @transform_0, window_bounds = array<i64: 1, 4, 256>}, {pipeline_mode = #tpu.pipeline_mode<synchronous>, transform_indices = @transform_1, window_bounds = array<i64: 8, 36>}, {pipeline_mode = #tpu.pipeline_mode<synchronous>, transform_indices = @transform_2, window_bounds = array<i64: 8, 1>}, {pipeline_mode = #tpu.pipeline_mode<synchronous>, transform_indices = @transform_3, window_bounds = array<i64: 8, 1>}, {pipeline_mode = #tpu.pipeline_mode<synchronous>, transform_indices = @transform_4, window_bounds = array<i64: 8, 72>}, {pipeline_mode = #tpu.pipeline_mode<synchronous>, transform_indices = @transform_5, window_bounds = array<i64: 8, 1>}, {pipeline_mode = #tpu.pipeline_mode<synchronous>, transform_indices = @transform_6, window_bounds = array<i64: 8, 1>}, {transform_indices = @transform_7, window_bounds = array<i64: 1, 8, 256>}]} {
    %c0 = arith.constant 0 : index
    %c0_0 = arith.constant 0 : index
    %c0_1 = arith.constant 0 : index
    %0 = vector.load %arg1[%c0, %c0_0, %c0_1] : memref<1x4x256xf32, #tpu.memory_space<vmem>>, vector<1x4x256xf32>
    %1 = vector.shape_cast %0 : vector<1x4x256xf32> to vector<4x256xf32>
    %2 = tpu.iota {dimensions = array<i32: 1>} : vector<1x256xi32>
    %c16_i32 = arith.constant 16 : i32
    %c0_i32 = arith.constant 0 : i32
    %3 = arith.cmpi eq, %c16_i32, %c0_i32 : i32
    %c1_i32 = arith.constant 1 : i32
    %4 = arith.select %3, %c1_i32, %c16_i32 : i32
    %5 = vector.broadcast %4 : i32 to vector<1x256xi32>
    %6 = arith.remsi %2, %5 : vector<1x256xi32>
    %c0_i32_2 = arith.constant 0 : i32
    %7 = vector.broadcast %c0_i32_2 : i32 to vector<1x256xi32>
    %8 = arith.cmpi ne, %6, %7 : vector<1x256xi32>
    %c0_i32_3 = arith.constant 0 : i32
    %9 = vector.broadcast %c0_i32_3 : i32 to vector<1x256xi32>
    %10 = arith.cmpi slt, %6, %9 : vector<1x256xi32>
    %c0_i32_4 = arith.constant 0 : i32
    %11 = arith.cmpi slt, %4, %c0_i32_4 : i32
    %12 = vector.broadcast %11 : i1 to vector<1x256xi1>
    %13 = vector.broadcast %12 : vector<1x256xi1> to vector<1x256xi1>
    %14 = arith.xori %10, %13 : vector<1x256xi1>
    %15 = arith.andi %14, %8 : vector<1x256xi1>
    %16 = vector.broadcast %4 : i32 to vector<1x256xi32>
    %17 = arith.addi %6, %16 : vector<1x256xi32>
    %18 = arith.select %15, %17, %6 : vector<1x256xi1>, vector<1x256xi32>
    %c0_i32_5 = arith.constant 0 : i32
    %19 = vector.broadcast %c0_i32_5 : i32 to vector<1x256xi32>
    %20 = arith.cmpi ne, %18, %19 : vector<1x256xi32>
    %c15_i32 = arith.constant 15 : i32
    %21 = vector.broadcast %c15_i32 : i32 to vector<1x256xi32>
    %22 = arith.cmpi ne, %18, %21 : vector<1x256xi32>
    %c0_6 = arith.constant 0 : index
    %c0_7 = arith.constant 0 : index
    %23 = vector.load %arg2[%c0_6, %c0_7] : memref<8x36xf32, #tpu.memory_space<vmem>>, vector<8x36xf32>
    %cst = arith.constant 0.000000e+00 : f32
    %24 = vector.broadcast %cst : f32 to vector<4x17xf32>
    %25 = vector.extract_strided_slice %1 {offsets = [0, 0], sizes = [4, 239], strides = [1, 1]} : vector<4x256xf32> to vector<4x239xf32>
    %26 = tpu.concatenate %24, %25 in 1 : vector<4x17xf32>, vector<4x239xf32> -> vector<4x256xf32>
    %cst_8 = arith.constant 0.000000e+00 : f32
    %27 = vector.shape_cast %20 : vector<1x256xi1> to vector<1x256xi1>
    %28 = vector.broadcast %27 : vector<1x256xi1> to vector<4x256xi1>
    %29 = vector.broadcast %cst_8 : f32 to vector<4x256xf32>
    %30 = arith.select %28, %26, %29 : vector<4x256xi1>, vector<4x256xf32>
    %cst_9 = arith.constant 0.000000e+00 : f32
    %31 = vector.broadcast %cst_9 : f32 to vector<4x16xf32>
    %32 = vector.extract_strided_slice %1 {offsets = [0, 0], sizes = [4, 240], strides = [1, 1]} : vector<4x256xf32> to vector<4x240xf32>
    %33 = tpu.concatenate %31, %32 in 1 : vector<4x16xf32>, vector<4x240xf32> -> vector<4x256xf32>
    %cst_10 = arith.constant 0.000000e+00 : f32
    %34 = vector.broadcast %cst_10 : f32 to vector<4x15xf32>
    %35 = vector.extract_strided_slice %1 {offsets = [0, 0], sizes = [4, 241], strides = [1, 1]} : vector<4x256xf32> to vector<4x241xf32>
    %36 = tpu.concatenate %34, %35 in 1 : vector<4x15xf32>, vector<4x241xf32> -> vector<4x256xf32>
    %cst_11 = arith.constant 0.000000e+00 : f32
    %37 = vector.shape_cast %22 : vector<1x256xi1> to vector<1x256xi1>
    %38 = vector.broadcast %37 : vector<1x256xi1> to vector<4x256xi1>
    %39 = vector.broadcast %cst_11 : f32 to vector<4x256xf32>
    %40 = arith.select %38, %36, %39 : vector<4x256xi1>, vector<4x256xf32>
    %cst_12 = arith.constant 0.000000e+00 : f32
    %41 = vector.broadcast %cst_12 : f32 to vector<4x1xf32>
    %42 = vector.extract_strided_slice %1 {offsets = [0, 0], sizes = [4, 255], strides = [1, 1]} : vector<4x256xf32> to vector<4x255xf32>
    %43 = tpu.concatenate %41, %42 in 1 : vector<4x1xf32>, vector<4x255xf32> -> vector<4x256xf32>
    %cst_13 = arith.constant 0.000000e+00 : f32
    %44 = vector.shape_cast %20 : vector<1x256xi1> to vector<1x256xi1>
    %45 = vector.broadcast %44 : vector<1x256xi1> to vector<4x256xi1>
    %46 = vector.broadcast %cst_13 : f32 to vector<4x256xf32>
    %47 = arith.select %45, %43, %46 : vector<4x256xi1>, vector<4x256xf32>
    %48 = vector.extract_strided_slice %1 {offsets = [0, 1], sizes = [4, 255], strides = [1, 1]} : vector<4x256xf32> to vector<4x255xf32>
    %cst_14 = arith.constant 0.000000e+00 : f32
    %49 = vector.broadcast %cst_14 : f32 to vector<4x1xf32>
    %50 = tpu.concatenate %48, %49 in 1 : vector<4x255xf32>, vector<4x1xf32> -> vector<4x256xf32>
    %cst_15 = arith.constant 0.000000e+00 : f32
    %51 = vector.shape_cast %22 : vector<1x256xi1> to vector<1x256xi1>
    %52 = vector.broadcast %51 : vector<1x256xi1> to vector<4x256xi1>
    %53 = vector.broadcast %cst_15 : f32 to vector<4x256xf32>
    %54 = arith.select %52, %50, %53 : vector<4x256xi1>, vector<4x256xf32>
    %55 = vector.extract_strided_slice %1 {offsets = [0, 15], sizes = [4, 241], strides = [1, 1]} : vector<4x256xf32> to vector<4x241xf32>
    %cst_16 = arith.constant 0.000000e+00 : f32
    %56 = vector.broadcast %cst_16 : f32 to vector<4x15xf32>
    %57 = tpu.concatenate %55, %56 in 1 : vector<4x241xf32>, vector<4x15xf32> -> vector<4x256xf32>
    %cst_17 = arith.constant 0.000000e+00 : f32
    %58 = vector.shape_cast %20 : vector<1x256xi1> to vector<1x256xi1>
    %59 = vector.broadcast %58 : vector<1x256xi1> to vector<4x256xi1>
    %60 = vector.broadcast %cst_17 : f32 to vector<4x256xf32>
    %61 = arith.select %59, %57, %60 : vector<4x256xi1>, vector<4x256xf32>
    %62 = vector.extract_strided_slice %1 {offsets = [0, 16], sizes = [4, 240], strides = [1, 1]} : vector<4x256xf32> to vector<4x240xf32>
    %cst_18 = arith.constant 0.000000e+00 : f32
    %63 = vector.broadcast %cst_18 : f32 to vector<4x16xf32>
    %64 = tpu.concatenate %62, %63 in 1 : vector<4x240xf32>, vector<4x16xf32> -> vector<4x256xf32>
    %65 = vector.extract_strided_slice %1 {offsets = [0, 17], sizes = [4, 239], strides = [1, 1]} : vector<4x256xf32> to vector<4x239xf32>
    %cst_19 = arith.constant 0.000000e+00 : f32
    %66 = vector.broadcast %cst_19 : f32 to vector<4x17xf32>
    %67 = tpu.concatenate %65, %66 in 1 : vector<4x239xf32>, vector<4x17xf32> -> vector<4x256xf32>
    %cst_20 = arith.constant 0.000000e+00 : f32
    %68 = vector.shape_cast %22 : vector<1x256xi1> to vector<1x256xi1>
    %69 = vector.broadcast %68 : vector<1x256xi1> to vector<4x256xi1>
    %70 = vector.broadcast %cst_20 : f32 to vector<4x256xf32>
    %71 = arith.select %69, %67, %70 : vector<4x256xi1>, vector<4x256xf32>
    %72 = tpu.concatenate %30, %33, %40, %47, %1, %54, %61, %64, %71 in 0 : vector<4x256xf32>, vector<4x256xf32>, vector<4x256xf32>, vector<4x256xf32>, vector<4x256xf32>, vector<4x256xf32>, vector<4x256xf32>, vector<4x256xf32>, vector<4x256xf32> -> vector<36x256xf32>
    %cst_21 = arith.constant dense<0.000000e+00> : vector<8x256xf32>
    %73 = tpu.matmul %23, %72, %cst_21 {dimension_numbers = #tpu.dot_dimension_numbers<[1], [0], [0], [1], [0, 0, 1, 1], [], []>} : vector<8x36xf32>, vector<36x256xf32>, vector<8x256xf32> -> vector<8x256xf32>
    %c0_22 = arith.constant 0 : index
    %c0_23 = arith.constant 0 : index
    %74 = vector.load %arg3[%c0_22, %c0_23] : memref<8x1xf32, #tpu.memory_space<vmem>>, vector<8x1xf32>
    %75 = vector.broadcast %74 : vector<8x1xf32> to vector<8x256xf32>
    %76 = arith.mulf %73, %75 : vector<8x256xf32>
    %c0_24 = arith.constant 0 : index
    %c0_25 = arith.constant 0 : index
    %77 = vector.load %arg4[%c0_24, %c0_25] : memref<8x1xf32, #tpu.memory_space<vmem>>, vector<8x1xf32>
    %78 = vector.broadcast %77 : vector<8x1xf32> to vector<8x256xf32>
    %79 = arith.addf %76, %78 : vector<8x256xf32>
    %cst_26 = arith.constant 0.000000e+00 : f32
    %80 = vector.broadcast %cst_26 : f32 to vector<8x256xf32>
    %81 = arith.maximumf %79, %80 : vector<8x256xf32>
    %c0_27 = arith.constant 0 : index
    %c0_28 = arith.constant 0 : index
    %82 = vector.load %arg5[%c0_27, %c0_28] : memref<8x72xf32, #tpu.memory_space<vmem>>, vector<8x72xf32>
    %cst_29 = arith.constant 0.000000e+00 : f32
    %83 = vector.broadcast %cst_29 : f32 to vector<8x17xf32>
    %84 = vector.extract_strided_slice %81 {offsets = [0, 0], sizes = [8, 239], strides = [1, 1]} : vector<8x256xf32> to vector<8x239xf32>
    %85 = tpu.concatenate %83, %84 in 1 : vector<8x17xf32>, vector<8x239xf32> -> vector<8x256xf32>
    %cst_30 = arith.constant 0.000000e+00 : f32
    %86 = vector.shape_cast %20 : vector<1x256xi1> to vector<1x256xi1>
    %87 = vector.broadcast %86 : vector<1x256xi1> to vector<8x256xi1>
    %88 = vector.broadcast %cst_30 : f32 to vector<8x256xf32>
    %89 = arith.select %87, %85, %88 : vector<8x256xi1>, vector<8x256xf32>
    %cst_31 = arith.constant 0.000000e+00 : f32
    %90 = vector.broadcast %cst_31 : f32 to vector<8x16xf32>
    %91 = vector.extract_strided_slice %81 {offsets = [0, 0], sizes = [8, 240], strides = [1, 1]} : vector<8x256xf32> to vector<8x240xf32>
    %92 = tpu.concatenate %90, %91 in 1 : vector<8x16xf32>, vector<8x240xf32> -> vector<8x256xf32>
    %cst_32 = arith.constant 0.000000e+00 : f32
    %93 = vector.broadcast %cst_32 : f32 to vector<8x15xf32>
    %94 = vector.extract_strided_slice %81 {offsets = [0, 0], sizes = [8, 241], strides = [1, 1]} : vector<8x256xf32> to vector<8x241xf32>
    %95 = tpu.concatenate %93, %94 in 1 : vector<8x15xf32>, vector<8x241xf32> -> vector<8x256xf32>
    %cst_33 = arith.constant 0.000000e+00 : f32
    %96 = vector.shape_cast %22 : vector<1x256xi1> to vector<1x256xi1>
    %97 = vector.broadcast %96 : vector<1x256xi1> to vector<8x256xi1>
    %98 = vector.broadcast %cst_33 : f32 to vector<8x256xf32>
    %99 = arith.select %97, %95, %98 : vector<8x256xi1>, vector<8x256xf32>
    %cst_34 = arith.constant 0.000000e+00 : f32
    %100 = vector.broadcast %cst_34 : f32 to vector<8x1xf32>
    %101 = vector.extract_strided_slice %81 {offsets = [0, 0], sizes = [8, 255], strides = [1, 1]} : vector<8x256xf32> to vector<8x255xf32>
    %102 = tpu.concatenate %100, %101 in 1 : vector<8x1xf32>, vector<8x255xf32> -> vector<8x256xf32>
    %cst_35 = arith.constant 0.000000e+00 : f32
    %103 = vector.shape_cast %20 : vector<1x256xi1> to vector<1x256xi1>
    %104 = vector.broadcast %103 : vector<1x256xi1> to vector<8x256xi1>
    %105 = vector.broadcast %cst_35 : f32 to vector<8x256xf32>
    %106 = arith.select %104, %102, %105 : vector<8x256xi1>, vector<8x256xf32>
    %107 = vector.extract_strided_slice %81 {offsets = [0, 1], sizes = [8, 255], strides = [1, 1]} : vector<8x256xf32> to vector<8x255xf32>
    %cst_36 = arith.constant 0.000000e+00 : f32
    %108 = vector.broadcast %cst_36 : f32 to vector<8x1xf32>
    %109 = tpu.concatenate %107, %108 in 1 : vector<8x255xf32>, vector<8x1xf32> -> vector<8x256xf32>
    %cst_37 = arith.constant 0.000000e+00 : f32
    %110 = vector.shape_cast %22 : vector<1x256xi1> to vector<1x256xi1>
    %111 = vector.broadcast %110 : vector<1x256xi1> to vector<8x256xi1>
    %112 = vector.broadcast %cst_37 : f32 to vector<8x256xf32>
    %113 = arith.select %111, %109, %112 : vector<8x256xi1>, vector<8x256xf32>
    %114 = vector.extract_strided_slice %81 {offsets = [0, 15], sizes = [8, 241], strides = [1, 1]} : vector<8x256xf32> to vector<8x241xf32>
    %cst_38 = arith.constant 0.000000e+00 : f32
    %115 = vector.broadcast %cst_38 : f32 to vector<8x15xf32>
    %116 = tpu.concatenate %114, %115 in 1 : vector<8x241xf32>, vector<8x15xf32> -> vector<8x256xf32>
    %cst_39 = arith.constant 0.000000e+00 : f32
    %117 = vector.shape_cast %20 : vector<1x256xi1> to vector<1x256xi1>
    %118 = vector.broadcast %117 : vector<1x256xi1> to vector<8x256xi1>
    %119 = vector.broadcast %cst_39 : f32 to vector<8x256xf32>
    %120 = arith.select %118, %116, %119 : vector<8x256xi1>, vector<8x256xf32>
    %121 = vector.extract_strided_slice %81 {offsets = [0, 16], sizes = [8, 240], strides = [1, 1]} : vector<8x256xf32> to vector<8x240xf32>
    %cst_40 = arith.constant 0.000000e+00 : f32
    %122 = vector.broadcast %cst_40 : f32 to vector<8x16xf32>
    %123 = tpu.concatenate %121, %122 in 1 : vector<8x240xf32>, vector<8x16xf32> -> vector<8x256xf32>
    %124 = vector.extract_strided_slice %81 {offsets = [0, 17], sizes = [8, 239], strides = [1, 1]} : vector<8x256xf32> to vector<8x239xf32>
    %cst_41 = arith.constant 0.000000e+00 : f32
    %125 = vector.broadcast %cst_41 : f32 to vector<8x17xf32>
    %126 = tpu.concatenate %124, %125 in 1 : vector<8x239xf32>, vector<8x17xf32> -> vector<8x256xf32>
    %cst_42 = arith.constant 0.000000e+00 : f32
    %127 = vector.shape_cast %22 : vector<1x256xi1> to vector<1x256xi1>
    %128 = vector.broadcast %127 : vector<1x256xi1> to vector<8x256xi1>
    %129 = vector.broadcast %cst_42 : f32 to vector<8x256xf32>
    %130 = arith.select %128, %126, %129 : vector<8x256xi1>, vector<8x256xf32>
    %131 = tpu.concatenate %89, %92, %99, %106, %81, %113, %120, %123, %130 in 0 : vector<8x256xf32>, vector<8x256xf32>, vector<8x256xf32>, vector<8x256xf32>, vector<8x256xf32>, vector<8x256xf32>, vector<8x256xf32>, vector<8x256xf32>, vector<8x256xf32> -> vector<72x256xf32>
    %cst_43 = arith.constant dense<0.000000e+00> : vector<8x256xf32>
    %132 = tpu.matmul %82, %131, %cst_43 {dimension_numbers = #tpu.dot_dimension_numbers<[1], [0], [0], [1], [0, 0, 1, 1], [], []>} : vector<8x72xf32>, vector<72x256xf32>, vector<8x256xf32> -> vector<8x256xf32>
    %c0_44 = arith.constant 0 : index
    %c0_45 = arith.constant 0 : index
    %133 = vector.load %arg6[%c0_44, %c0_45] : memref<8x1xf32, #tpu.memory_space<vmem>>, vector<8x1xf32>
    %134 = vector.broadcast %133 : vector<8x1xf32> to vector<8x256xf32>
    %135 = arith.mulf %132, %134 : vector<8x256xf32>
    %c0_46 = arith.constant 0 : index
    %c0_47 = arith.constant 0 : index
    %136 = vector.load %arg7[%c0_46, %c0_47] : memref<8x1xf32, #tpu.memory_space<vmem>>, vector<8x1xf32>
    %137 = vector.broadcast %136 : vector<8x1xf32> to vector<8x256xf32>
    %138 = arith.addf %135, %137 : vector<8x256xf32>
    %cst_48 = arith.constant 0.000000e+00 : f32
    %139 = vector.broadcast %cst_48 : f32 to vector<8x256xf32>
    %140 = arith.maximumf %138, %139 : vector<8x256xf32>
    %c0_49 = arith.constant 0 : index
    %c0_50 = arith.constant 0 : index
    %c0_51 = arith.constant 0 : index
    %141 = vector.load %arg8[%c0_49, %c0_50, %c0_51] : memref<1x8x256xf32, #tpu.memory_space<vmem>>, vector<1x8x256xf32>
    %142 = vector.shape_cast %141 : vector<1x8x256xf32> to vector<8x256xf32>
    %143 = vector.shape_cast %140 : vector<8x256xf32> to vector<1x8x256xf32>
    tpu.vector_store %arg8[%c0_49, %c0_50, %c0_51], %143 {strides = array<i32>} : memref<1x8x256xf32, #tpu.memory_space<vmem>>, vector<1x8x256xf32>,
    return
  }
  func.func @transform_0(%arg0: i32) -> (i32, i32, i32) {
    %c0_i32 = arith.constant 0 : i32
    %c0_i32_0 = arith.constant 0 : i32
    %c0_i32_1 = arith.constant 0 : i32
    return %arg0, %c0_i32, %c0_i32_0 : i32, i32, i32
  }
  func.func @transform_1(%arg0: i32) -> (i32, i32) {
    %c0_i32 = arith.constant 0 : i32
    %c0_i32_0 = arith.constant 0 : i32
    %c0_i32_1 = arith.constant 0 : i32
    return %c0_i32, %c0_i32_0 : i32, i32
  }
  func.func @transform_2(%arg0: i32) -> (i32, i32) {
    %c0_i32 = arith.constant 0 : i32
    %c0_i32_0 = arith.constant 0 : i32
    %c0_i32_1 = arith.constant 0 : i32
    return %c0_i32, %c0_i32_0 : i32, i32
  }
  func.func @transform_3(%arg0: i32) -> (i32, i32) {
    %c0_i32 = arith.constant 0 : i32
    %c0_i32_0 = arith.constant 0 : i32
    %c0_i32_1 = arith.constant 0 : i32
    return %c0_i32, %c0_i32_0 : i32, i32
  }
  func.func @transform_4(%arg0: i32) -> (i32, i32) {
    %c0_i32 = arith.constant 0 : i32
    %c0_i32_0 = arith.constant 0 : i32
    %c0_i32_1 = arith.constant 0 : i32
    return %c0_i32, %c0_i32_0 : i32, i32
  }
  func.func @transform_5(%arg0: i32) -> (i32, i32) {
    %c0_i32 = arith.constant 0 : i32
    %c0_i32_0 = arith.constant 0 : i32
    %c0_i32_1 = arith.constant 0 : i32
    return %c0_i32, %c0_i32_0 : i32, i32
  }
  func.func @transform_6(%arg0: i32) -> (i32, i32) {
    %c0_i32 = arith.constant 0 : i32
    %c0_i32_0 = arith.constant 0 : i32
    %c0_i32_1 = arith.constant 0 : i32
    return %c0_i32, %c0_i32_0 : i32, i32
  }
  func.func @transform_7(%arg0: i32) -> (i32, i32, i32) {
    %c0_i32 = arith.constant 0 : i32
    %c0_i32_0 = arith.constant 0 : i32
    %c0_i32_1 = arith.constant 0 : i32
    return %arg0, %c0_i32, %c0_i32_0 : i32, i32, i32
  }
}

</mosaic_0001>

<bundles_post_ra>
// kernel: conv_block_forward.1
= control target key start
LH: loop header
LB: loop body
LE: loop exit
PB: predicated region body
PF: predicated region fallthrough
CT: control target
= control target key end

     0   :  { %s875_s24 = smov 0   ;;  %s1076_s0 = inlined_call_operand.vmem [shape: f32[2,4,256], index: 0, kind: input, shape index: {}]   ;;  %s1077_s1 = inlined_call_operand.vmem [shape: f32[8,36], index: 1, kind: input, shape index: {}]   ;;  %s1078_s2 = inlined_call_operand.vmem [shape: f32[8,1], index: 2, kind: input, shape index: {}]   ;;  %s1079_s3 = inlined_call_operand.vmem [shape: f32[8,1], index: 3, kind: input, shape index: {}]   ;;  %s1080_s4 = inlined_call_operand.vmem [shape: f32[8,72], index: 4, kind: input, shape index: {}]   ;;  %s1081_s5 = inlined_call_operand.vmem [shape: f32[8,1], index: 5, kind: input, shape index: {}]   ;;  %s1082_s6 = inlined_call_operand.vmem [shape: f32[8,1], index: 6, kind: input, shape index: {}]   ;;  %s1083_s7 = inlined_call_operand.vmem [shape: f32[2,8,256], index: 7, kind: output, shape index: {}]  }
   0x1 LB: > { %s764_s25 = sadd.s32 4294967295, %s823_s24   ;;  %p768_p0 = scmp.ge.s32.totalorder %s823_s24, 1  ;;  %s823_s24 = sphi %s875_s24, %s17_s24  }
   0x2   : > { %p237_p1 = scmp.lt.s32.totalorder %s823_s24, 3 }
   0x4   : > { %p238_p2 = pnand %p768_p0, %p237_p1 }
   0x5   : > { %p269_p3 = scmp.lt.s32.totalorder (!%p238_p2), %s764_s25, 1  ;;  %s825_s30 = smov (!%p238_p2), 111  }
   0x6   : > { %241 = sbr.rel (%p238_p2) target bundleno = 710 (0x2c6), region = 48  ;;  %s826_s8 = smov (!%p238_p2), 112  }
   0x7   : > { %s827_s9 = smov (!%p238_p2), 127   ;;  %s828_s10 = smov (!%p238_p2), 113  }
   0x8   : > { %s829_s11 = smov (!%p238_p2), 1   ;;  %s831_s12 = smov (!%p238_p2), 15  }
   0x9   : > { %s833_s13 = smov (!%p238_p2), 16   ;;  %s834_s14 = smov (!%p238_p2), 17  }
   0xb   : > { %s1093_s25 = smov (!%p269_p3, %s764_s25), 1  ;;  %v830_v2 = vmov 0.0   ;;  %v832_v3 = vmov 0   ;;  %v517_v4 = vld [vmem:[%s1078_s2] sm:$0xff]  ;;  %v280_v6 = vlaneseq  ;;  %vm367_vm0 = vcmask 1039360  }
   0xc   : > { %s794_s26 = sshll.u32 %s1093_s25, 3  ;;  %510 = vmatprep.mubr.f32.mxu0 %v830_v2  ;;  %682 = vmatprep.mubr.f32.mxu1 %v830_v2  ;;  %v525_v5 = vld [vmem:[%s1079_s3] sm:$0xff]  ;;  %vm389_vm1 = vcmask 916480   ;;  %vm378_vm3 = vcmask 924672   ;;  %vm397_vm4 = vcmask 908288   ;;  %vm427_vm7 = vcmask 1043456  }
   0xd   : > { %s273_s29 = scalar_lea.vmem %s1076_s0, %s794_s26  ;;  %814 = vset.pattern.permute.xlu0 %v832_v3  ;;  %815 = vset.pattern.permute.xlu1 %v832_v3  ;;  %v281_v7 = vand.u32 127, %v280_v6  ;;  %vm356_vm9 = vcmask 7168   ;;  %vm341_vm10 = vcmask 121856   ;;  %vm333_vm11 = vcmask 130048   ;;  %v535_v15 = vld [vmem:[%s1080_s4] sm:$0xff] }
   0xe   : > { %v889_v0 = vld [vmem:[%s273_s29] sm:$0xff]  ;;  %vm318_vm12 = vcmask 138240   ;;  %vm436_vm13 = vcmask 293888   ;;  %vm787_vm14 = vmneg %vm333_vm11  ;;  %vm614_vm15 = vcmask 588800   ;;  %s795_s29 = sshll.u32 %s1093_s25, 4 }
   0xf   : > { %393 = vrot.lane.b32.xlu1 %v889_v0, %s825_s30  ;;  %385 = vrot.lane.b32.xlu0 %v889_v0, %s826_s8  ;;  %v897_v1 = vcombine.high %v889_v0, %v889_v0  ;;  %v282_v8 = vadd.s32 128, %v281_v7  ;;  %v287_v12 = vand.u32 15, %v281_v7 }
  0x11   : > { %v294_v11 = vand.u32 15, %v282_v8  ;;  %vm943_vm6 = vcmp.ne.s32.totalorder %v287_v12, 15  ;;  %vm960_vm8 = vcmp.ne.s32.totalorder %v287_v12, 0 }
  0x13   : > { %365 = vrot.lane.b32.xlu1 %v897_v1, %s827_s9  ;;  %387 = vrot.lane.b32.xlu0 %v897_v1, %s826_s8  ;;  %vm933_vm2 = vcmp.ne.s32.totalorder %v294_v11, 15  ;;  %vm939_vm5 = vcmp.ne.s32.totalorder %v294_v11, 0  ;;  %v311_v11 = vld [vmem:[%s1077_s1] sm:$0xff] }
  0x17   : > { %376 = vrot.lane.b32.xlu1 %v897_v1, %s828_s10  ;;  %395 = vrot.lane.b32.xlu0 %v897_v1, %s825_s30 }
  0x1b   : > { %374 = vrot.lane.b32.xlu1 %v889_v0, %s828_s10  ;;  %363 = vrot.lane.b32.xlu0 %v889_v0, %s827_s9 }
  0x1f   : > { %354 = vrot.lane.b32.xlu1 %v897_v1, %s829_s11  ;;  %352 = vrot.lane.b32.xlu0 %v889_v0, %s829_s11 }
  0x23   : > { %339 = vrot.lane.b32.xlu1 %v897_v1, %s831_s12  ;;  %337 = vrot.lane.b32.xlu0 %v889_v0, %s831_s12 }
  0x27   : > { %331 = vrot.lane.b32.xlu1 %v897_v1, %s833_s13  ;;  %329 = vrot.lane.b32.xlu0 %v889_v0, %s833_s13 }
  0x2b   : > { %316 = vrot.lane.b32.xlu1 %v897_v1, %s834_s14  ;;  %314 = vrot.lane.b32.xlu0 %v889_v0, %s834_s14 }
  0x2f   : > { %520 = vperm.xlu0 %814, %v517_v4   ;;  %528 = vperm.xlu1 %815, %v525_v5  }
  0x81   : > { %v394_v9 = vpop.permute.xlu1 %393  ;;  %v386_v10 = vpop.permute.xlu0 %385 }
  0x85   : > { %v366_v13 = vpop.permute.xlu1 %365  ;;  %v388_v14 = vpop.permute.xlu0 %387 }
  0x86   : > { %v371_v16 = vsel %vm367_vm0, %v366_v13, 0.0  ;;  %v392_v17 = vsel %vm389_vm1, %v388_v14, 0.0  ;;  %v390_v27 = vsel %vm389_vm1, %v386_v10, %v388_v14 }
  0x87   : > { %v373_v20 = vsel %vm933_vm2, %v371_v16, 0.0  ;;  %v424_v23 = vrot.slane %v392_v17, 4  ;;  %v423_v36 = vrot.slane %v390_v27, 4 }
  0x88   : > { %v419_v33 = vrot.slane %v373_v20, 4 }
  0x89   : > { %v377_v21 = vpop.permute.xlu1 %376  ;;  %v396_v22 = vpop.permute.xlu0 %395 }
  0x8a   : > { %v382_v24 = vsel %vm378_vm3, %v377_v21, 0.0  ;;  %v398_v25 = vsel %vm397_vm4, %v394_v9, %v396_v22  ;;  %v401_v26 = vsel %vm397_vm4, %v396_v22, 0.0  ;;  %v433_v45 = vsel %vm427_vm7, %v897_v1, %v419_v33 }
  0x8b   : > { %v384_v28 = vsel %vm939_vm5, %v382_v24, 0.0  ;;  %v403_v29 = vsel %vm933_vm2, %v401_v26, 0.0  ;;  %v402_v30 = vsel %vm943_vm6, %v398_v25, 0.0  ;;  %v689_v25 = vld [vmem:[%s1081_s5] sm:$0xff] }
  0x8c   : > { %773 = vmatprep.subr.msk.mxu0 %vm427_vm7, %v403_v29  ;;  %v435_v32 = vsel %vm427_vm7, %v384_v28, %v424_v23  ;;  %v697_v26 = vld [vmem:[%s1082_s6] sm:$0xff] }
  0x8d   : > { %v375_v34 = vpop.permute.xlu1 %374  ;;  %774 = vmatpush1.msk.msra.mxu0 %vm427_vm7, %v402_v30  ;;  %v364_v35 = vpop.permute.xlu0 %363 }
  0x8e   : > { %v379_v37 = vsel %vm378_vm3, %v375_v34, %v377_v21  ;;  %v368_v38 = vsel %vm367_vm0, %v364_v35, %v366_v13  ;;  %470 = vmatprep.subr.mxu0 %v435_v32 }
  0x8f   : > { %v383_v39 = vsel %vm960_vm8, %v379_v37, 0.0  ;;  %v372_v40 = vsel %vm943_vm6, %v368_v38, 0.0 }
  0x90   : > { %v418_v41 = vrot.slane %v372_v40, 4  ;;  %v434_v42 = vsel %vm427_vm7, %v383_v39, %v423_v36 }
  0x91   : > { %v355_v43 = vpop.permute.xlu1 %354  ;;  %471 = vmatpush1.msra.mxu0 %v434_v42  ;;  %v353_v44 = vpop.permute.xlu0 %352 }
  0x92   : > { %v357_v46 = vsel %vm356_vm9, %v353_v44, %v355_v43  ;;  %v360_v47 = vsel %vm356_vm9, 0.0, %v353_v44  ;;  %472 = vmatprep.subr.mxu0 %v433_v45  ;;  %v432_v48 = vsel %vm427_vm7, %v889_v0, %v418_v41 }
  0x93   : > { %v361_v49 = vsel %vm960_vm8, %v360_v47, 0.0  ;;  %v362_v50 = vsel %vm939_vm5, %v357_v46, 0.0  ;;  %473 = vmatpush1.msra.mxu0 %v432_v48 }
  0x94   : > { %v411_v53 = vrot.slane %v361_v49, 4  ;;  %v412_v54 = vrot.slane %v362_v50, 4 }
  0x95   : > { %v340_v51 = vpop.permute.xlu1 %339  ;;  %v338_v52 = vpop.permute.xlu0 %337 }
  0x96   : > { %v342_v55 = vsel %vm341_vm10, %v338_v52, %v340_v51  ;;  %v345_v56 = vsel %vm341_vm10, 0.0, %v338_v52 }
  0x97   : > { %v350_v57 = vsel %vm943_vm6, %v345_v56, 0.0  ;;  %v351_v58 = vsel %vm933_vm2, %v342_v55, 0.0 }
  0x98   : > { %v431_v59 = vsel %vm427_vm7, %v351_v58, %v412_v54  ;;  %v430_v60 = vsel %vm427_vm7, %v350_v57, %v411_v53 }
  0x99   : > { %v332_v61 = vpop.permute.xlu1 %331  ;;  %474 = vmatprep.subr.mxu0 %v431_v59  ;;  %v330_v62 = vpop.permute.xlu0 %329 }
  0x9a   : > { %475 = vmatpush1.msra.mxu0 %v430_v60  ;;  %v334_v63 = vsel %vm333_vm11, %v330_v62, %v332_v61  ;;  %v336_v0 = vsel %vm333_vm11, 0.0, %v330_v62 }
  0x9b   : > { %v405_v3 = vrot.slane %v336_v0, 4  ;;  %v406_v4 = vrot.slane %v334_v63, 4 }
  0x9d   : > { %v317_v1 = vpop.permute.xlu1 %316  ;;  %v315_v2 = vpop.permute.xlu0 %314 }
  0x9e   : > { %v319_v5 = vsel %vm318_vm12, %v315_v2, %v317_v1  ;;  %v322_v6 = vsel %vm318_vm12, 0.0, %v315_v2 }
  0x9f   : > { %v327_v7 = vsel %vm960_vm8, %v322_v6, 0.0  ;;  %v328_v8 = vsel %vm939_vm5, %v319_v5, 0.0 }
  0xa0   : > { %v429_v9 = vsel %vm427_vm7, %v328_v8, %v406_v4  ;;  %v428_v10 = vsel %vm427_vm7, %v327_v7, %v405_v3 }
  0xa1   : > { %476 = vmatprep.subr.mxu0 %v429_v9 }
  0xa2   : > { %477 = vmatpush1.msra.mxu0 %v428_v10 }
  0xa3   : > { %775 = vmatmul.mubr.msk.f32.vlgmr.msra.gmra.mxu0 %vm436_vm13, %v311_v11 }
  0xaa   : > { %v521_v12 = vpop.permute.xlu0 %520  ;;  %v529_v14 = vpop.permute.xlu1 %528 }
 0x163   : > { %v512_v13 = vpop.f32.mrf.mxu0 }
 0x164   : > { %v523_v16 = vmul.f32 %v521_v12, %v512_v13 }
 0x165   : > { %v514_v17 = vpop.f32.mrf.mxu0 }
 0x166   : > { %v531_v20 = vadd.f32 %v529_v14, %v523_v16  ;;  %v524_v22 = vmul.f32 %v521_v12, %v514_v17 }
 0x168   : > { %v533_v21 = vmax.f32 %v531_v20, 0.0  ;;  %v532_v23 = vadd.f32 %v529_v14, %v524_v22 }
 0x16a   : > { %596 = vrot.lane.b32.xlu1 %v533_v21, %s826_s8  ;;  %604 = vrot.lane.b32.xlu0 %v533_v21, %s825_s30  ;;  %v534_v24 = vmax.f32 %v532_v23, 0.0 }
 0x16e   : > { %566 = vrot.lane.b32.xlu1 %v533_v21, %s829_s11  ;;  %586 = vrot.lane.b32.xlu0 %v533_v21, %s828_s10 }
 0x172   : > { %606 = vrot.lane.b32.xlu1 %v534_v24, %s825_s30  ;;  %576 = vrot.lane.b32.xlu0 %v533_v21, %s827_s9 }
 0x176   : > { %588 = vrot.lane.b32.xlu1 %v534_v24, %s828_s10  ;;  %598 = vrot.lane.b32.xlu0 %v534_v24, %s826_s8 }
 0x17a   : > { %578 = vrot.lane.b32.xlu1 %v534_v24, %s827_s9  ;;  %568 = vrot.lane.b32.xlu0 %v534_v24, %s829_s11  ;;  %s278_s9 = scalar_lea.vmem %s1083_s7, %s795_s29 }
 0x17e   : > { %556 = vrot.lane.b32.xlu1 %v533_v21, %s831_s12  ;;  %558 = vrot.lane.b32.xlu0 %v534_v24, %s831_s12 }
 0x182   : > { %548 = vrot.lane.b32.xlu1 %v533_v21, %s833_s13  ;;  %550 = vrot.lane.b32.xlu0 %v534_v24, %s833_s13 }
 0x186   : > { %538 = vrot.lane.b32.xlu1 %v533_v21, %s834_s14  ;;  %540 = vrot.lane.b32.xlu0 %v534_v24, %s834_s14 }
 0x18a   : > { %692 = vperm.xlu1 %815, %v689_v25   ;;  %700 = vperm.xlu0 %814, %v697_v26  }
 0x1dc   : > { %v597_v27 = vpop.permute.xlu1 %596  ;;  %v605_v28 = vpop.permute.xlu0 %604 }
 0x1e0   : > { %v567_v29 = vpop.permute.xlu1 %566  ;;  %v587_v30 = vpop.permute.xlu0 %586 }
 0x1e1   : > { %v573_v48 = vsel %vm356_vm9, 0.0, %v567_v29 }
 0x1e4   : > { %v607_v32 = vpop.permute.xlu1 %606  ;;  %v577_v33 = vpop.permute.xlu0 %576 }
 0x1e5   : > { %v611_v34 = vsel %vm397_vm4, %v607_v32, 0.0  ;;  %v608_v35 = vsel %vm397_vm4, %v605_v28, %v607_v32 }
 0x1e6   : > { %776 = vmatprep.subr.msk.mxu1 %vm933_vm2, %v611_v34 }
 0x1e7   : > { %777 = vmatpush1.msk.msra.mxu1 %vm943_vm6, %v608_v35 }
 0x1e8   : > { %v589_v36 = vpop.permute.xlu1 %588  ;;  %v599_v37 = vpop.permute.xlu0 %598 }
 0x1e9   : > { %v593_v38 = vsel %vm378_vm3, %v589_v36, 0.0  ;;  %778 = vmatprep.subr.msk.mxu1 %vm389_vm1, %v599_v37  ;;  %v600_v39 = vsel %vm389_vm1, %v597_v27, %v599_v37  ;;  %v590_v40 = vsel %vm378_vm3, %v587_v30, %v589_v36 }
 0x1ea   : > { %635 = vmatpush1.msra.mxu1 %v600_v39 }
 0x1eb   : > { %779 = vmatprep.subr.msk.mxu1 %vm939_vm5, %v593_v38 }
 0x1ec   : > { %v579_v41 = vpop.permute.xlu1 %578  ;;  %780 = vmatpush1.msk.msra.mxu1 %vm960_vm8, %v590_v40  ;;  %v569_v42 = vpop.permute.xlu0 %568 }
 0x1ed   : > { %v580_v43 = vsel %vm367_vm0, %v577_v33, %v579_v41  ;;  %v583_v44 = vsel %vm367_vm0, %v579_v41, 0.0  ;;  %v570_v47 = vsel %vm356_vm9, %v567_v29, %v569_v42 }
 0x1ee   : > { %781 = vmatprep.subr.msk.mxu1 %vm933_vm2, %v583_v44 }
 0x1ef   : > { %782 = vmatpush1.msk.msra.mxu1 %vm943_vm6, %v580_v43 }
 0x1f0   : > { %v557_v45 = vpop.permute.xlu1 %556  ;;  %640 = vmatprep.subr.mxu1 %v534_v24  ;;  %v559_v46 = vpop.permute.xlu0 %558 }
 0x1f1   : > { %641 = vmatpush1.msra.mxu1 %v533_v21  ;;  %v560_v49 = vsel %vm341_vm10, %v557_v45, %v559_v46  ;;  %v563_v50 = vsel %vm341_vm10, 0.0, %v557_v45 }
 0x1f2   : > { %783 = vmatprep.subr.msk.mxu1 %vm939_vm5, %v570_v47 }
 0x1f3   : > { %784 = vmatpush1.msk.msra.mxu1 %vm960_vm8, %v573_v48 }
 0x1f4   : > { %v549_v51 = vpop.permute.xlu1 %548  ;;  %785 = vmatprep.subr.msk.mxu1 %vm933_vm2, %v560_v49  ;;  %v551_v52 = vpop.permute.xlu0 %550 }
 0x1f5   : > { %786 = vmatpush1.msk.msra.mxu1 %vm943_vm6, %v563_v50  ;;  %v552_v53 = vsel %vm333_vm11, %v549_v51, %v551_v52 }
 0x1f6   : > { %646 = vmatprep.subr.mxu1 %v552_v53 }
 0x1f7   : > { %788 = vmatpush1.msk.msra.mxu1 %vm787_vm14, %v549_v51 }
 0x1f8   : > { %v539_v54 = vpop.permute.xlu1 %538  ;;  %v541_v55 = vpop.permute.xlu0 %540 }
 0x1f9   : > { %v545_v56 = vsel %vm318_vm12, 0.0, %v539_v54  ;;  %v542_v57 = vsel %vm318_vm12, %v539_v54, %v541_v55 }
 0x1fa   : > { %789 = vmatprep.subr.msk.mxu1 %vm939_vm5, %v542_v57 }
 0x1fb   : > { %790 = vmatpush1.msk.msra.mxu1 %vm960_vm8, %v545_v56 }
 0x1fc   : > { %791 = vmatmul.mubr.msk.f32.vlgmr.msra.gmra.mxu1 %vm614_vm15, %v535_v15 }
 0x205   : > { %v693_v19 = vpop.permute.xlu1 %692  ;;  %v701_v60 = vpop.permute.xlu0 %700 }
 0x2bc   : > { %v684_v58 = vpop.f32.mrf.mxu1 }
 0x2bd   : > { %v695_v59 = vmul.f32 %v693_v19, %v684_v58 }
 0x2be   : > { %v686_v61 = vpop.f32.mrf.mxu1 }
 0x2bf   : > { %v703_v62 = vadd.f32 %v701_v60, %v695_v59  ;;  %v696_v63 = vmul.f32 %v693_v19, %v686_v61 }
 0x2c1   : > { %v705_v0 = vmax.f32 %v703_v62, 0.0  ;;  %v704_v1 = vadd.f32 %v701_v60, %v696_v63 }
 0x2c3   : > { %707 = vst [vmem:[%s278_s9] sm:$0xff] %v705_v0  ;;  %v706_v18 = vmax.f32 %v704_v1, 0.0 }
 0x2c5   : > { %708 = vst [vmem:[%s278_s9 + $0x8] sm:$0xff] %v706_v18 }
 0x2c6 PF: > { %s17_s24 = sadd.s32 1, %s823_s24  }
 0x2c7   : > { %p14_p4 = scmp.ge.s32.totalorder %s17_s24, 4  }
 0x2c9   :  { %16 = sbr.rel (!%p14_p4) target bundleno = 1 (0x1), region = 78 }

</bundles_post_ra>
